<compile_context>
chip_gen: v7x
topology: tpu7x:2x2x1
jax: 0.10.0
libtpu: 0.0.40
codegen_flags: <defaults>
</compile_context>

<pallas_src>
import functools

import jax
import jax.numpy as jnp
from jax import lax
from jax.experimental import pallas as pl
from jax.experimental.pallas import tpu as pltpu


# ------------------------------- Pallas kernel -------------------------------
def _basic_block_kernel(x_ref, w1p_ref, w1c_ref, w1n_ref, b1e_ref,
                        w2p_ref, w2c_ref, w2n_ref, b2_ref, out_ref, *, H):
    """One block of stacked images (TM = imgs_per_block * H rows) per step.

    x_ref  : (TM, W*Cin)   bf16 scanline activations (lane = w*Cin + ci)
    w1p/n  : (W*Cin,  W*Cout)    bf16 conv1 band, taps kh=0 / kh=2 (BN1 folded)
    w1c    : (W*Cin,  2*W*Cout)  bf16 conv1 center tap || 1x1-downsample block-diag
    w2p/c/n: (W*Cout, W*Cout)    bf16 conv2 band taps (BN2 folded)
    b1e    : (1, 2*W*Cout) f32   [BN1 bias || downsample-BN bias]
    b2     : (1, W*Cout)   f32   BN2 bias
    out_ref: (TM, W*Cout)  f32   lane-dense output (full-width vst)
    """
    TM = x_ref.shape[0]
    Lout = out_ref.shape[1]

    # Static intra-image row masks: the wrapper packs whole images per block
    # (TM % H == 0), so the in-image row index is just (block row % H).
    row = lax.broadcasted_iota(jnp.int32, (TM, 1), 0) % H
    has_prev = row != 0          # row r-1 belongs to the same image
    has_next = row != (H - 1)    # row r+1 belongs to the same image

    def prev_rows(a):            # y[r] = a[r-1], zero at image-top rows
        z = jnp.zeros((1, a.shape[1]), a.dtype)
        s = jnp.concatenate([z, a[:-1, :]], axis=0)
        return jnp.where(has_prev, s, 0)

    def next_rows(a):            # y[r] = a[r+1], zero at image-bottom rows
        z = jnp.zeros((1, a.shape[1]), a.dtype)
        s = jnp.concatenate([a[1:, :], z], axis=0)
        return jnp.where(has_next, s, 0)

    x = x_ref[...]               # (TM, W*Cin) bf16

    # conv1 (+BN1) and the 1x1 downsample (+BN) fused: the center-tap weight
    # carries 2*W*Cout columns, so this dot has N=256 on v6e/v7x.
    acc = jnp.dot(x, w1c_ref[...], preferred_element_type=jnp.float32)  # (TM, 2*Lout)
    acc = acc + b1e_ref[...]
    res = acc[:, Lout:]                                                 # downsample branch
    y1 = acc[:, :Lout]
    y1 = y1 + jnp.dot(prev_rows(x), w1p_ref[...], preferred_element_type=jnp.float32)
    y1 = y1 + jnp.dot(next_rows(x), w1n_ref[...], preferred_element_type=jnp.float32)
    y1 = jnp.maximum(y1, 0.0).astype(jnp.bfloat16)                      # ReLU, bf16 for conv2

    # conv2 (+BN2): three tap-accumulated MXU matmuls, K = W*Cout each.
    y2 = jnp.dot(y1, w2c_ref[...], preferred_element_type=jnp.float32) + b2_ref[...]
    y2 = y2 + jnp.dot(prev_rows(y1), w2p_ref[...], preferred_element_type=jnp.float32)
    y2 = y2 + jnp.dot(next_rows(y1), w2n_ref[...], preferred_element_type=jnp.float32)

    # residual add + final ReLU, f32 epilogue, lane-dense stores.
    out_ref[...] = jnp.maximum(y2 + res, 0.0).astype(out_ref.dtype)


# --------------------------- parameter preprocessing --------------------------
def _fold_bn(gamma, beta, mean, var, eps=1e-5):
    scale = gamma / jnp.sqrt(var + eps)
    bias = beta - mean * scale
    return scale.astype(jnp.float32), bias.astype(jnp.float32)


def _band_taps(w_hwio, W):
    """Per-kh banded matmul operands for a 3x3 SAME conv in scanline layout.

    w_hwio: (3, 3, Ci, Co).  Returns 3 matrices of shape (W*Ci, W*Co); row
    index is w_in*Ci + ci, column index is w_out*Co + co, entry is
    w_hwio[kh, kw, ci, co] where kw - 1 == w_in - w_out (zero outside the
    band), which also implements SAME zero padding along W.
    """
    _, _, Ci, Co = w_hwio.shape
    taps = []
    for kh in range(3):
        blk = jnp.zeros((W, Ci, W, Co), jnp.float32)
        for kw in range(3):
            dw = kw - 1
            shift = jnp.eye(W, k=-dw, dtype=jnp.float32)   # w_in == w_out + dw
            blk = blk + shift[:, None, :, None] * w_hwio[kh, kw][None, :, None, :]
        taps.append(blk.reshape(W * Ci, W * Co))
    return taps


def prepare_params(w1_hwio, bn1, w2_hwio, bn2, wd_io, bnd, W):
    """Fold eval-mode BN into the conv weights and build bf16 matmul operands."""
    s1, b1 = _fold_bn(*bn1)
    s2, b2 = _fold_bn(*bn2)
    sd, bd = _fold_bn(*bnd)

    t1 = _band_taps(w1_hwio * s1, W)                               # 3 x (W*Cin,  W*Cout)
    t2 = _band_taps(w2_hwio * s2, W)                               # 3 x (W*Cout, W*Cout)
    Wd = jnp.kron(jnp.eye(W, dtype=jnp.float32), wd_io * sd)       # (W*Cin,    W*Cout)

    # Fold the 1x1 downsample into the *center* conv1 tap as extra columns.
    W1p = t1[0].astype(jnp.bfloat16)
    W1c = jnp.concatenate([t1[1], Wd], axis=1).astype(jnp.bfloat16)  # (W*Cin, 2*W*Cout)
    W1n = t1[2].astype(jnp.bfloat16)
    W2p, W2c, W2n = (t.astype(jnp.bfloat16) for t in t2)

    B1e = jnp.concatenate([jnp.tile(b1, W), jnp.tile(bd, W)]).reshape(1, -1)  # f32
    B2 = jnp.tile(b2, W).reshape(1, -1)                                       # f32
    return W1p, W1c, W1n, B1e, W2p, W2c, W2n, B2


# ----------------------------------- wrapper ----------------------------------
def _pick_images_per_block(N, H, tm_target=256, tm_floor=128):
    """Stack whole images per block, targeting ~tm_target rows per MXU matmul.

    Prefers >= 2 grid steps (so v7x can use both TensorCores) as long as each
    block still spans at least a full 128-row MXU tile; otherwise maximizes M.
    """
    divisors = [d for d in range(1, N + 1) if N % d == 0 and d * H <= tm_target]
    if not divisors:
        return 1
    good = [d for d in divisors if N // d >= 2 and d * H >= tm_floor]
    return max(good) if good else max(divisors)


def basic_block_pallas(x_nhwc, params, *, tm_target=256):
    """NHWC-in / NHWC-out fused basic block (no NCHW round-trips in the hot path)."""
    W1p, W1c, W1n, B1e, W2p, W2c, W2n, B2 = params
    N, H, W, Cin = x_nhwc.shape
    Lin = W * Cin
    Lout = B2.shape[-1]
    Cout = Lout // W

    # NHWC -> (N*H, W*Cin) scanlines: contiguous reshape (free); bf16
    # activations halve HBM/VMEM bytes and feed the MXU natively.
    x2 = x_nhwc.astype(jnp.bfloat16).reshape(N * H, Lin)

    imgs = _pick_images_per_block(N, H, tm_target)
    TM = imgs * H
    num_blocks = (N * H) // TM

    kernel = functools.partial(_basic_block_kernel, H=H)
    const = lambda n: (0, 0)   # resident weights / biases

    out2 = pl.pallas_call(
        kernel,
        out_shape=jax.ShapeDtypeStruct((N * H, Lout), jnp.float32),
        grid_spec=pltpu.PrefetchScalarGridSpec(
            num_scalar_prefetch=0,
            grid=(num_blocks,),
            in_specs=[
                pl.BlockSpec((TM, Lin), lambda n: (n, 0)),     # activations
                pl.BlockSpec(W1p.shape, const),                # conv1 tap kh=0
                pl.BlockSpec(W1c.shape, const),                # conv1 kh=1 || downsample
                pl.BlockSpec(W1n.shape, const),                # conv1 tap kh=2
                pl.BlockSpec(B1e.shape, const),
                pl.BlockSpec(W2p.shape, const),                # conv2 taps
                pl.BlockSpec(W2c.shape, const),
                pl.BlockSpec(W2n.shape, const),
                pl.BlockSpec(B2.shape, const),
            ],
            out_specs=pl.BlockSpec((TM, Lout), lambda n: (n, 0)),
        ),
        compiler_params=pltpu.CompilerParams(
            dimension_semantics=("parallel",)),                # v7x: both TCs
        # When scaling W/C, also set vmem_limit_bytes here (v7x: 64 MiB VMEM)
        # and single-buffer the resident weights (pipeline_mode=pl.Buffered(1)).
    )(x2, W1p, W1c, W1n, B1e, W2p, W2c, W2n, B2)

    return out2.reshape(N, H, W, Cout)   # contiguous view, stays NHWC


def basic_block_pallas_nchw(x_nchw, params):
    """Drop-in PyTorch-interface shim (NCHW).  In an NHWC end-to-end model
    these two transposes disappear (perf review item: no extra HBM passes)."""
    y = basic_block_pallas(jnp.transpose(x_nchw, (0, 2, 3, 1)), params)
    return jnp.transpose(y, (0, 3, 1, 2))


# ----------------------------- reference (plain JAX) --------------------------
def _ref_conv3x3(x_nhwc, w_hwio):
    N, H, W, Ci = x_nhwc.shape
    Co = w_hwio.shape[-1]
    xp = jnp.pad(x_nhwc, ((0, 0), (1, 1), (1, 1), (0, 0)))
    out = jnp.zeros((N, H, W, Co), jnp.float32)
    for di in range(3):
        for dj in range(3):
            out = out + jnp.einsum('nhwi,io->nhwo',
                                   xp[:, di:di + H, dj:dj + W, :],
                                   w_hwio[di, dj],
                                   precision=lax.Precision.HIGHEST)
    return out


def basic_block_ref(x_nhwc, w1_eff, b1, w2_eff, b2, wd_eff, bd):
    """f32 reference over the same (bf16-rounded, BN-folded) operands."""
    cvec = lambda v: v.reshape(1, 1, 1, -1)
    h1 = _ref_conv3x3(x_nhwc, w1_eff) + cvec(b1)
    h1 = jnp.maximum(h1, 0.0)
    h1 = h1.astype(jnp.bfloat16).astype(jnp.float32)     # kernel feeds conv2 in bf16
    h2 = _ref_conv3x3(h1, w2_eff) + cvec(b2)
    res = jnp.einsum('nhwi,io->nhwo', x_nhwc, wd_eff,
                     precision=lax.Precision.HIGHEST) + cvec(bd)
    return jnp.maximum(h2 + res, 0.0)


# ----------------------------- deterministic setup -----------------------------
def _bn_raw(key, c):
    k1, k2, k3, k4 = jax.random.split(key, 4)
    gamma = 1.0 + 0.1 * jax.random.normal(k1, (c,), jnp.float32)
    beta = 0.1 * jax.random.normal(k2, (c,), jnp.float32)
    mean = 0.1 * jax.random.normal(k3, (c,), jnp.float32)
    var = 0.5 + jnp.abs(jax.random.normal(k4, (c,), jnp.float32))
    return gamma, beta, mean, var


if __name__ == "__main__":
    key = jax.random.PRNGKey(0)
    ks = jax.random.split(key, 8)

    N, Cin, Cout, H, W = 2, 4, 8, 16, 16

    # Conv weights in HWIO (deterministic init, not a checkpoint load).
    w1_hwio = 0.1 * jax.random.normal(ks[0], (3, 3, Cin, Cout), jnp.float32)
    w2_hwio = 0.1 * jax.random.normal(ks[1], (3, 3, Cout, Cout), jnp.float32)
    wd_io = 0.1 * jax.random.normal(ks[2], (Cin, Cout), jnp.float32)

    bn1 = _bn_raw(ks[3], Cout)
    bn2 = _bn_raw(ks[4], Cout)
    bnd = _bn_raw(ks[5], Cout)

    params = prepare_params(w1_hwio, bn1, w2_hwio, bn2, wd_io, bnd, W)

    # PyTorch-style NCHW input; converted once at model ingest (the block
    # itself runs NHWC end-to-end).
    x_nchw = jax.random.normal(ks[6], (N, Cin, H, W), jnp.float32)
    x_nhwc = jnp.transpose(x_nchw, (0, 2, 3, 1))

    fwd = jax.jit(basic_block_pallas)
    out = jax.block_until_ready(fwd(x_nhwc, params))
    assert out.shape == (N, H, W, Cout), out.shape

    # Reference over the same bf16-rounded, BN-folded operands the kernel uses.
    s1, b1 = _fold_bn(*bn1)
    s2, b2 = _fold_bn(*bn2)
    sd, bd = _fold_bn(*bnd)
    bf = lambda a: a.astype(jnp.bfloat16).astype(jnp.float32)
    ref = jax.block_until_ready(
        basic_block_ref(bf(x_nhwc), bf(w1_hwio * s1), b1,
                        bf(w2_hwio * s2), b2, bf(wd_io * sd), bd))

    max_err = float(jnp.max(jnp.abs(out - ref)))
    assert jnp.allclose(out, ref, rtol=2e-2, atol=2e-2), max_err

    print("KERNEL_OK")
</pallas_src>

<mosaic_0001>
module attributes {stable_mosaic.version = 11 : i64} {
  func.func @_basic_block_kernel(%arg0: i32, %arg1: memref<32x64xbf16, #tpu.memory_space<vmem>>, %arg2: memref<64x128xbf16, #tpu.memory_space<vmem>>, %arg3: memref<64x256xbf16, #tpu.memory_space<vmem>>, %arg4: memref<64x128xbf16, #tpu.memory_space<vmem>>, %arg5: memref<1x256xf32, #tpu.memory_space<vmem>>, %arg6: memref<128x128xbf16, #tpu.memory_space<vmem>>, %arg7: memref<128x128xbf16, #tpu.memory_space<vmem>>, %arg8: memref<128x128xbf16, #tpu.memory_space<vmem>>, %arg9: memref<1x128xf32, #tpu.memory_space<vmem>>, %arg10: memref<32x128xf32, #tpu.memory_space<vmem>>) attributes {dimension_semantics = [#tpu.dimension_semantics<parallel>], iteration_bounds = array<i64: 1>, scalar_prefetch = 0 : i64, scratch_operands = 0 : i64, tpu.core_type = #tpu.core_type<tc>, window_params = [{transform_indices = @transform_0, window_bounds = array<i64: 32, 64>}, {pipeline_mode = #tpu.pipeline_mode<synchronous>, transform_indices = @transform_1, window_bounds = array<i64: 64, 128>}, {pipeline_mode = #tpu.pipeline_mode<synchronous>, transform_indices = @transform_2, window_bounds = array<i64: 64, 256>}, {pipeline_mode = #tpu.pipeline_mode<synchronous>, transform_indices = @transform_3, window_bounds = array<i64: 64, 128>}, {pipeline_mode = #tpu.pipeline_mode<synchronous>, transform_indices = @transform_4, window_bounds = array<i64: 1, 256>}, {pipeline_mode = #tpu.pipeline_mode<synchronous>, transform_indices = @transform_5, window_bounds = array<i64: 128, 128>}, {pipeline_mode = #tpu.pipeline_mode<synchronous>, transform_indices = @transform_6, window_bounds = array<i64: 128, 128>}, {pipeline_mode = #tpu.pipeline_mode<synchronous>, transform_indices = @transform_7, window_bounds = array<i64: 128, 128>}, {pipeline_mode = #tpu.pipeline_mode<synchronous>, transform_indices = @transform_8, window_bounds = array<i64: 1, 128>}, {transform_indices = @transform_9, window_bounds = array<i64: 32, 128>}]} {
    %0 = tpu.iota {dimensions = array<i32: 0>} : vector<32x1xi32>
    %c16_i32 = arith.constant 16 : i32
    %c0_i32 = arith.constant 0 : i32
    %1 = arith.cmpi eq, %c16_i32, %c0_i32 : i32
    %c1_i32 = arith.constant 1 : i32
    %2 = arith.select %1, %c1_i32, %c16_i32 : i32
    %3 = vector.broadcast %2 : i32 to vector<32x1xi32>
    %4 = arith.remsi %0, %3 : vector<32x1xi32>
    %c0_i32_0 = arith.constant 0 : i32
    %5 = vector.broadcast %c0_i32_0 : i32 to vector<32x1xi32>
    %6 = arith.cmpi ne, %4, %5 : vector<32x1xi32>
    %c0_i32_1 = arith.constant 0 : i32
    %7 = vector.broadcast %c0_i32_1 : i32 to vector<32x1xi32>
    %8 = arith.cmpi slt, %4, %7 : vector<32x1xi32>
    %c0_i32_2 = arith.constant 0 : i32
    %9 = arith.cmpi slt, %2, %c0_i32_2 : i32
    %10 = vector.broadcast %9 : i1 to vector<32x1xi1>
    %11 = vector.broadcast %10 : vector<32x1xi1> to vector<32x1xi1>
    %12 = arith.xori %8, %11 : vector<32x1xi1>
    %13 = arith.andi %12, %6 : vector<32x1xi1>
    %14 = vector.broadcast %2 : i32 to vector<32x1xi32>
    %15 = arith.addi %4, %14 : vector<32x1xi32>
    %16 = arith.select %13, %15, %4 : vector<32x1xi1>, vector<32x1xi32>
    %c0_i32_3 = arith.constant 0 : i32
    %17 = vector.broadcast %c0_i32_3 : i32 to vector<32x1xi32>
    %18 = arith.cmpi ne, %16, %17 : vector<32x1xi32>
    %c15_i32 = arith.constant 15 : i32
    %19 = vector.broadcast %c15_i32 : i32 to vector<32x1xi32>
    %20 = arith.cmpi ne, %16, %19 : vector<32x1xi32>
    %c0 = arith.constant 0 : index
    %c0_4 = arith.constant 0 : index
    %21 = vector.load %arg1[%c0, %c0_4] : memref<32x64xbf16, #tpu.memory_space<vmem>>, vector<32x64xbf16>
    %c0_5 = arith.constant 0 : index
    %c0_6 = arith.constant 0 : index
    %22 = vector.load %arg3[%c0_5, %c0_6] : memref<64x256xbf16, #tpu.memory_space<vmem>>, vector<64x256xbf16>
    %cst = arith.constant dense<0.000000e+00> : vector<32x256xf32>
    %23 = tpu.matmul %21, %22, %cst {dimension_numbers = #tpu.dot_dimension_numbers<[1], [0], [0], [1], [0, 0, 1, 1], [], []>} : vector<32x64xbf16>, vector<64x256xbf16>, vector<32x256xf32> -> vector<32x256xf32>
    %c0_7 = arith.constant 0 : index
    %c0_8 = arith.constant 0 : index
    %24 = vector.load %arg5[%c0_7, %c0_8] : memref<1x256xf32, #tpu.memory_space<vmem>>, vector<1x256xf32>
    %25 = vector.broadcast %24 : vector<1x256xf32> to vector<32x256xf32>
    %26 = arith.addf %23, %25 : vector<32x256xf32>
    %27 = vector.extract_strided_slice %26 {offsets = [0, 128], sizes = [32, 128], strides = [1, 1]} : vector<32x256xf32> to vector<32x128xf32>
    %28 = vector.extract_strided_slice %26 {offsets = [0, 0], sizes = [32, 128], strides = [1, 1]} : vector<32x256xf32> to vector<32x128xf32>
    %cst_9 = arith.constant 0.000000e+00 : bf16
    %29 = vector.broadcast %cst_9 : bf16 to vector<1x64xbf16>
    %30 = vector.extract_strided_slice %21 {offsets = [0, 0], sizes = [31, 64], strides = [1, 1]} : vector<32x64xbf16> to vector<31x64xbf16>
    %31 = tpu.concatenate %29, %30 in 0 : vector<1x64xbf16>, vector<31x64xbf16> -> vector<32x64xbf16>
    %c0_i32_10 = arith.constant 0 : i32
    %32 = arith.sitofp %c0_i32_10 : i32 to bf16
    %33 = vector.shape_cast %18 : vector<32x1xi1> to vector<32x1xi1>
    %34 = vector.broadcast %33 : vector<32x1xi1> to vector<32x64xi1>
    %35 = vector.broadcast %32 : bf16 to vector<32x64xbf16>
    %36 = arith.select %34, %31, %35 : vector<32x64xi1>, vector<32x64xbf16>
    %c0_11 = arith.constant 0 : index
    %c0_12 = arith.constant 0 : index
    %37 = vector.load %arg2[%c0_11, %c0_12] : memref<64x128xbf16, #tpu.memory_space<vmem>>, vector<64x128xbf16>
    %cst_13 = arith.constant dense<0.000000e+00> : vector<32x128xf32>
    %38 = tpu.matmul %36, %37, %cst_13 {dimension_numbers = #tpu.dot_dimension_numbers<[1], [0], [0], [1], [0, 0, 1, 1], [], []>} : vector<32x64xbf16>, vector<64x128xbf16>, vector<32x128xf32> -> vector<32x128xf32>
    %39 = arith.addf %28, %38 : vector<32x128xf32>
    %cst_14 = arith.constant 0.000000e+00 : bf16
    %40 = vector.broadcast %cst_14 : bf16 to vector<1x64xbf16>
    %41 = vector.extract_strided_slice %21 {offsets = [1, 0], sizes = [31, 64], strides = [1, 1]} : vector<32x64xbf16> to vector<31x64xbf16>
    %42 = tpu.concatenate %41, %40 in 0 : vector<31x64xbf16>, vector<1x64xbf16> -> vector<32x64xbf16>
    %c0_i32_15 = arith.constant 0 : i32
    %43 = arith.sitofp %c0_i32_15 : i32 to bf16
    %44 = vector.shape_cast %20 : vector<32x1xi1> to vector<32x1xi1>
    %45 = vector.broadcast %44 : vector<32x1xi1> to vector<32x64xi1>
    %46 = vector.broadcast %43 : bf16 to vector<32x64xbf16>
    %47 = arith.select %45, %42, %46 : vector<32x64xi1>, vector<32x64xbf16>
    %c0_16 = arith.constant 0 : index
    %c0_17 = arith.constant 0 : index
    %48 = vector.load %arg4[%c0_16, %c0_17] : memref<64x128xbf16, #tpu.memory_space<vmem>>, vector<64x128xbf16>
    %cst_18 = arith.constant dense<0.000000e+00> : vector<32x128xf32>
    %49 = tpu.matmul %47, %48, %cst_18 {dimension_numbers = #tpu.dot_dimension_numbers<[1], [0], [0], [1], [0, 0, 1, 1], [], []>} : vector<32x64xbf16>, vector<64x128xbf16>, vector<32x128xf32> -> vector<32x128xf32>
    %50 = arith.addf %39, %49 : vector<32x128xf32>
    %cst_19 = arith.constant 0.000000e+00 : f32
    %51 = vector.broadcast %cst_19 : f32 to vector<32x128xf32>
    %52 = arith.maximumf %50, %51 : vector<32x128xf32>
    %53 = arith.truncf %52 : vector<32x128xf32> to vector<32x128xbf16>
    %c0_20 = arith.constant 0 : index
    %c0_21 = arith.constant 0 : index
    %54 = vector.load %arg7[%c0_20, %c0_21] : memref<128x128xbf16, #tpu.memory_space<vmem>>, vector<128x128xbf16>
    %cst_22 = arith.constant dense<0.000000e+00> : vector<32x128xf32>
    %55 = tpu.matmul %53, %54, %cst_22 {dimension_numbers = #tpu.dot_dimension_numbers<[1], [0], [0], [1], [0, 0, 1, 1], [], []>} : vector<32x128xbf16>, vector<128x128xbf16>, vector<32x128xf32> -> vector<32x128xf32>
    %c0_23 = arith.constant 0 : index
    %c0_24 = arith.constant 0 : index
    %56 = vector.load %arg9[%c0_23, %c0_24] : memref<1x128xf32, #tpu.memory_space<vmem>>, vector<1x128xf32>
    %57 = vector.broadcast %56 : vector<1x128xf32> to vector<32x128xf32>
    %58 = arith.addf %55, %57 : vector<32x128xf32>
    %cst_25 = arith.constant 0.000000e+00 : bf16
    %59 = vector.broadcast %cst_25 : bf16 to vector<1x128xbf16>
    %60 = vector.extract_strided_slice %53 {offsets = [0, 0], sizes = [31, 128], strides = [1, 1]} : vector<32x128xbf16> to vector<31x128xbf16>
    %61 = tpu.concatenate %59, %60 in 0 : vector<1x128xbf16>, vector<31x128xbf16> -> vector<32x128xbf16>
    %c0_i32_26 = arith.constant 0 : i32
    %62 = arith.sitofp %c0_i32_26 : i32 to bf16
    %63 = vector.shape_cast %18 : vector<32x1xi1> to vector<32x1xi1>
    %64 = vector.broadcast %63 : vector<32x1xi1> to vector<32x128xi1>
    %65 = vector.broadcast %62 : bf16 to vector<32x128xbf16>
    %66 = arith.select %64, %61, %65 : vector<32x128xi1>, vector<32x128xbf16>
    %c0_27 = arith.constant 0 : index
    %c0_28 = arith.constant 0 : index
    %67 = vector.load %arg6[%c0_27, %c0_28] : memref<128x128xbf16, #tpu.memory_space<vmem>>, vector<128x128xbf16>
    %cst_29 = arith.constant dense<0.000000e+00> : vector<32x128xf32>
    %68 = tpu.matmul %66, %67, %cst_29 {dimension_numbers = #tpu.dot_dimension_numbers<[1], [0], [0], [1], [0, 0, 1, 1], [], []>} : vector<32x128xbf16>, vector<128x128xbf16>, vector<32x128xf32> -> vector<32x128xf32>
    %69 = arith.addf %58, %68 : vector<32x128xf32>
    %cst_30 = arith.constant 0.000000e+00 : bf16
    %70 = vector.broadcast %cst_30 : bf16 to vector<1x128xbf16>
    %71 = vector.extract_strided_slice %53 {offsets = [1, 0], sizes = [31, 128], strides = [1, 1]} : vector<32x128xbf16> to vector<31x128xbf16>
    %72 = tpu.concatenate %71, %70 in 0 : vector<31x128xbf16>, vector<1x128xbf16> -> vector<32x128xbf16>
    %c0_i32_31 = arith.constant 0 : i32
    %73 = arith.sitofp %c0_i32_31 : i32 to bf16
    %74 = vector.shape_cast %20 : vector<32x1xi1> to vector<32x1xi1>
    %75 = vector.broadcast %74 : vector<32x1xi1> to vector<32x128xi1>
    %76 = vector.broadcast %73 : bf16 to vector<32x128xbf16>
    %77 = arith.select %75, %72, %76 : vector<32x128xi1>, vector<32x128xbf16>
    %c0_32 = arith.constant 0 : index
    %c0_33 = arith.constant 0 : index
    %78 = vector.load %arg8[%c0_32, %c0_33] : memref<128x128xbf16, #tpu.memory_space<vmem>>, vector<128x128xbf16>
    %cst_34 = arith.constant dense<0.000000e+00> : vector<32x128xf32>
    %79 = tpu.matmul %77, %78, %cst_34 {dimension_numbers = #tpu.dot_dimension_numbers<[1], [0], [0], [1], [0, 0, 1, 1], [], []>} : vector<32x128xbf16>, vector<128x128xbf16>, vector<32x128xf32> -> vector<32x128xf32>
    %80 = arith.addf %69, %79 : vector<32x128xf32>
    %81 = arith.addf %80, %27 : vector<32x128xf32>
    %cst_35 = arith.constant 0.000000e+00 : f32
    %82 = vector.broadcast %cst_35 : f32 to vector<32x128xf32>
    %83 = arith.maximumf %81, %82 : vector<32x128xf32>
    %c0_36 = arith.constant 0 : index
    %c0_37 = arith.constant 0 : index
    %84 = vector.load %arg10[%c0_36, %c0_37] : memref<32x128xf32, #tpu.memory_space<vmem>>, vector<32x128xf32>
    tpu.vector_store %arg10[%c0_36, %c0_37], %83 {strides = array<i32>} : memref<32x128xf32, #tpu.memory_space<vmem>>, vector<32x128xf32>,
    return
  }
  func.func @transform_0(%arg0: i32) -> (i32, i32) {
    %c0_i32 = arith.constant 0 : i32
    %c0_i32_0 = arith.constant 0 : i32
    return %arg0, %c0_i32 : i32, i32
  }
  func.func @transform_1(%arg0: i32) -> (i32, i32) {
    %c0_i32 = arith.constant 0 : i32
    %c0_i32_0 = arith.constant 0 : i32
    %c0_i32_1 = arith.constant 0 : i32
    return %c0_i32, %c0_i32_0 : i32, i32
  }
  func.func @transform_2(%arg0: i32) -> (i32, i32) {
    %c0_i32 = arith.constant 0 : i32
    %c0_i32_0 = arith.constant 0 : i32
    %c0_i32_1 = arith.constant 0 : i32
    return %c0_i32, %c0_i32_0 : i32, i32
  }
  func.func @transform_3(%arg0: i32) -> (i32, i32) {
    %c0_i32 = arith.constant 0 : i32
    %c0_i32_0 = arith.constant 0 : i32
    %c0_i32_1 = arith.constant 0 : i32
    return %c0_i32, %c0_i32_0 : i32, i32
  }
  func.func @transform_4(%arg0: i32) -> (i32, i32) {
    %c0_i32 = arith.constant 0 : i32
    %c0_i32_0 = arith.constant 0 : i32
    %c0_i32_1 = arith.constant 0 : i32
    return %c0_i32, %c0_i32_0 : i32, i32
  }
  func.func @transform_5(%arg0: i32) -> (i32, i32) {
    %c0_i32 = arith.constant 0 : i32
    %c0_i32_0 = arith.constant 0 : i32
    %c0_i32_1 = arith.constant 0 : i32
    return %c0_i32, %c0_i32_0 : i32, i32
  }
  func.func @transform_6(%arg0: i32) -> (i32, i32) {
    %c0_i32 = arith.constant 0 : i32
    %c0_i32_0 = arith.constant 0 : i32
    %c0_i32_1 = arith.constant 0 : i32
    return %c0_i32, %c0_i32_0 : i32, i32
  }
  func.func @transform_7(%arg0: i32) -> (i32, i32) {
    %c0_i32 = arith.constant 0 : i32
    %c0_i32_0 = arith.constant 0 : i32
    %c0_i32_1 = arith.constant 0 : i32
    return %c0_i32, %c0_i32_0 : i32, i32
  }
  func.func @transform_8(%arg0: i32) -> (i32, i32) {
    %c0_i32 = arith.constant 0 : i32
    %c0_i32_0 = arith.constant 0 : i32
    %c0_i32_1 = arith.constant 0 : i32
    return %c0_i32, %c0_i32_0 : i32, i32
  }
  func.func @transform_9(%arg0: i32) -> (i32, i32) {
    %c0_i32 = arith.constant 0 : i32
    %c0_i32_0 = arith.constant 0 : i32
    return %arg0, %c0_i32 : i32, i32
  }
}

</mosaic_0001>

<bundles_post_ra>
// kernel: basic_block_pallas.1
= control target key start
LH: loop header
LB: loop body
LE: loop exit
PB: predicated region body
PF: predicated region fallthrough
CT: control target
= control target key end

     0   :  { %v35_v0 = vlaneseq  ;;  %v1143_v2 = vmov 0   ;;  %vm230_vm0 = vsmask.f32 256  ;;  %vm246_vm1 = vcmask 1040384   ;;  %s1459_s2 = inlined_call_operand.vmem [shape: bf16[64,256], index: 2, kind: input, shape index: {}]   ;;  %s1460_s1 = inlined_call_operand.vmem [shape: bf16[64,128], index: 1, kind: input, shape index: {}]   ;;  %s1461_s0 = inlined_call_operand.vmem [shape: bf16[32,64], index: 0, kind: input, shape index: {}]   ;;  %s1462_s3 = inlined_call_operand.vmem [shape: bf16[64,128], index: 3, kind: input, shape index: {}]   ;;  %s1463_s6 = inlined_call_operand.vmem [shape: bf16[128,128], index: 6, kind: input, shape index: {}]   ;;  %s1464_s5 = inlined_call_operand.vmem [shape: bf16[128,128], index: 5, kind: input, shape index: {}]   ;;  %s1465_s7 = inlined_call_operand.vmem [shape: bf16[128,128], index: 7, kind: input, shape index: {}]   ;;  %s1466_s4 = inlined_call_operand.vmem [shape: f32[1,256], index: 4, kind: input, shape index: {}]   ;;  %s1467_s8 = inlined_call_operand.vmem [shape: f32[1,128], index: 8, kind: input, shape index: {}]   ;;  %s1468_s9 = inlined_call_operand.vmem [shape: f32[32,128], index: 9, kind: output, shape index: {}]  }
   0x1   :  { %v1097_v1 = vld [vmem:[%s1459_s2 + $0x4] ss:$8 sps:$4 sm:$0xff]   ;;  %209 = vmatprep.mubr.bf16.mxu0 %v1143_v2  ;;  %v1099_v3 = vld [vmem:[%s1459_s2] ss:$8 sps:$4 sm:$0xff]   ;;  %v1101_v6 = vld [vmem:[%s1459_s2 + $0x14] ss:$8 sps:$4 sm:$0xff]  }
   0x2   :  { %177 = vmatprep.subr.bf16.mxu0 %v1097_v1  ;;  %v1100_v4 = vld [vmem:[%s1460_s1] sm:$0xff]   ;;  %v1205_v5 = vshrl.u32 %v35_v0, 7  ;;  %v1103_v7 = vld [vmem:[%s1459_s2 + $0x10] ss:$8 sps:$4 sm:$0xff]   ;;  %v1104_v8 = vld [vmem:[%s1460_s1 + $0x8] sm:$0xff]   ;;  %vm170_vm2 = vcmask 523264  }
   0x3   :  { %178 = vmatpush1.bf16.msra.mxu0 %v1099_v3  ;;  %999 = vmatprep.subr.bf16.mxu1 %v1100_v4  ;;  %v1105_v11 = vld [vmem:[%s1459_s2 + $0x24] ss:$8 sps:$4 sm:$0xff]   ;;  %v1107_v12 = vld [vmem:[%s1459_s2 + $0x20] ss:$8 sps:$4 sm:$0xff]   ;;  %v1108_v14 = vld [vmem:[%s1460_s1 + $0x10] sm:$0xff]   ;;  %vm1144_vm8 = vmmov 1  }
   0x4   :  { %v44_v9 = vand.u32 15, %v1205_v5  ;;  %v38_v10 = vadd.s32 16, %v1205_v5  ;;  %1000 = vmatpush3.bf16.msra.mxu1 %v1100_v4  ;;  %179 = vmatprep.subr.bf16.mxu0 %v1101_v6  ;;  %v37_v13 = vadd.s32 8, %v1205_v5  ;;  %v1109_v18 = vld [vmem:[%s1459_s2 + $0x34] ss:$8 sps:$4 sm:$0xff]   ;;  %v1113_v21 = vld [vmem:[%s1461_s0] sm:$0xff]   ;;  %vm258_vm9 = vmpackc.low %vm1144_vm8, %vm1144_vm8 }
   0x5   :  { %1001 = vmatprep.subr.bf16.mxu1 %v1104_v8  ;;  %v1111_v19 = vld [vmem:[%s1459_s2 + $0x30] ss:$8 sps:$4 sm:$0xff]   ;;  %v39_v23 = vadd.s32 24, %v1205_v5  ;;  %v1114_v24 = vld [vmem:[%s1462_s3] sm:$0xff]   ;;  %vm366_vm7 = vsmask.f32 7424  ;;  %vm1269_vm11 = vmand %vm246_vm1, %vm230_vm0 }
   0x6   :  { %vm1228_vm3 = vcmp.ne.s32.totalorder %v44_v9, 0  ;;  %v58_v16 = vand.u32 15, %v38_v10  ;;  %v51_v17 = vand.u32 15, %v37_v13  ;;  %v1112_v20 = vld [vmem:[%s1460_s1 + $0x18] sm:$0xff]   ;;  %v231_v26 = vshrl.u32 %v1113_v21, 16  ;;  %v1115_v29 = vld [vmem:[%s1461_s0 + $0x8] sm:$0xff]  }
   0x7   :  { %180 = vmatpush1.bf16.msra.mxu0 %v1103_v7  ;;  %vm257_vm5 = vmpackc.low %vm1228_vm3, %vm1228_vm3  ;;  %v234_v27 = vshll.u32 %v1113_v21, 16  ;;  %v262_v30 = vsel %vm258_vm9, 65537, %v1143_v2  ;;  %v65_v31 = vand.u32 15, %v39_v23  ;;  %v237_v36 = vshrl.u32 %v1115_v29, 16  ;;  %v1116_v43 = vld [vmem:[%s1462_s3 + $0x8] sm:$0xff]   ;;  %v1117_v54 = vld [vmem:[%s1462_s3 + $0x10] sm:$0xff]  }
   0x8   :  { %181 = vmatprep.subr.bf16.mxu0 %v1105_v11  ;;  %1002 = vmatpush3.bf16.msra.mxu1 %v1104_v8  ;;  %vm1244_vm4 = vcmp.ne.s32.totalorder %v58_v16, 0  ;;  %vm1255_vm6 = vcmp.ne.s32.totalorder %v51_v17, 15  ;;  %v261_v28 = vsel %vm257_vm5, 65537, %v1143_v2  ;;  %v233_v32 = vrot.slane %v231_v26, 7  ;;  %v1118_v60 = vld [vmem:[%s1462_s3 + $0x18] sm:$0xff]   ;;  %v1120_v4 = vld [vmem:[%s1463_s6 + $0x8] sm:$0xff]  }
   0x9   :  { %1003 = vmatprep.subr.bf16.mxu1 %v1108_v14  ;;  %vm259_vm10 = vmpackc.low %vm1244_vm4, %vm1244_vm4  ;;  %v912_v34 = vcombine.low %v261_v28, %v262_v30  ;;  %v367_v35 = vrot.slane %v234_v27, 1  ;;  %v240_v37 = vshll.u32 %v1115_v29, 16  ;;  %v239_v41 = vrot.slane %v237_v36, 7  ;;  %v1121_v6 = vld [vmem:[%s1464_s5] sm:$0xff]   ;;  %v1122_v7 = vld [vmem:[%s1463_s6 + $0x10] sm:$0xff]  }
   0xa   :  { %v263_v38 = vsel %vm259_vm10, 65537, %v1143_v2  ;;  %vm386_vm12 = vmpackc.low %vm1255_vm6, %vm1255_vm6  ;;  %v236_v39 = vor.u32 %v234_v27, %v233_v32  ;;  %vm1285_vm14 = vcmp.ne.s32.totalorder %v65_v31, 15  ;;  %vm374_vm3 = vcmask 1047552   ;;  %v1123_v8 = vld [vmem:[%s1464_s5 + $0x8] sm:$0xff]   ;;  %v1124_v9 = vld [vmem:[%s1463_s6 + $0x18] sm:$0xff]  }
   0xb   :  { %182 = vmatpush1.bf16.msra.mxu0 %v1107_v12  ;;  %vm1277_vm13 = vcmp.ne.s16.totalorder %v912_v34, 0  ;;  %v913_v42 = vcombine.low %v263_v38, %v262_v30  ;;  %v368_v44 = vor.u32 %v367_v35, %v231_v26  ;;  %v369_v45 = vrot.slane %v240_v37, 1  ;;  %vm388_vm1 = vmpackc.low %vm1285_vm14, %vm1285_vm14  ;;  %v1125_v10 = vld [vmem:[%s1464_s5 + $0x10] sm:$0xff]   ;;  %v1126_v11 = vld [vmem:[%s1463_s6 + $0x20] sm:$0xff]  }
   0xc   :  { %183 = vmatprep.subr.bf16.mxu0 %v1109_v18  ;;  %1004 = vmatpush3.bf16.msra.mxu1 %v1108_v14  ;;  %v390_v46 = vsel %vm386_vm12, 65537, %v1143_v2  ;;  %v248_v48 = vsel %vm1269_vm11, 0, %v236_v39  ;;  %v242_v49 = vor.u32 %v240_v37, %v239_v41  ;;  %v392_v58 = vsel %vm388_vm1, 65537, %v1143_v2  ;;  %vm1317_vm5 = vmand %vm374_vm3, %vm366_vm7  ;;  %v1127_v12 = vld [vmem:[%s1464_s5 + $0x18] sm:$0xff]   ;;  %v1128_v13 = vld [vmem:[%s1463_s6 + $0x28] sm:$0xff]  }
   0xd   :  { %1005 = vmatprep.subr.bf16.mxu1 %v1112_v20  ;;  %vm1292_vm15 = vcmp.ne.s16.totalorder %v913_v42, 0  ;;  %v920_v51 = vcombine.low %v262_v30, %v390_v46  ;;  %v273_v52 = vsel %vm1277_vm13, %v248_v48, 0  ;;  %v370_v55 = vsel %vm366_vm7, %v368_v44, %v369_v45  ;;  %v1129_v14 = vld [vmem:[%s1464_s5 + $0x20] sm:$0xff]   ;;  %v1130_v15 = vld [vmem:[%s1463_s6 + $0x30] sm:$0xff]   ;;  %v1131_v16 = vld [vmem:[%s1464_s5 + $0x28] sm:$0xff]  }
   0xe   :  { %1007 = vmatprep.mubr.msk.bf16.mxu1 %vm170_vm2, %v273_v52  ;;  %v243_v53 = vsel %vm230_vm0, %v233_v32, %v242_v49  ;;  %v371_v62 = vor.u32 %v369_v45, %v237_v36  ;;  %v921_v63 = vcombine.low %v262_v30, %v392_v58  ;;  %v1132_v17 = vld [vmem:[%s1463_s6 + $0x38] sm:$0xff]   ;;  %v1133_v18 = vld [vmem:[%s1464_s5 + $0x30] sm:$0xff]   ;;  %v1392_v22 = vld [vmem:[%s1466_s4] sm:$0x3] }
   0xf   :  { %184 = vmatpush1.bf16.msra.mxu0 %v1111_v19  ;;  %vm1308_vm4 = vcmp.ne.s16.totalorder %v920_v51, 0  ;;  %v274_v57 = vsel %vm1292_vm15, %v243_v53, 0  ;;  %v1134_v19 = vld [vmem:[%s1464_s5 + $0x38] sm:$0xff]   ;;  %v1137_v33 = vld [vmem:[%s1465_s7 + $0x10] sm:$0xff]   ;;  %v1139_v40 = vld [vmem:[%s1465_s7 + $0x20] sm:$0xff]  }
  0x10   :  { %1011 = vmatprep.subr.bf16.mxu0 %v1114_v24  ;;  %1006 = vmatpush3.bf16.msra.mxu1 %v1112_v20  ;;  %v401_v61 = vsel %vm1308_vm4, %v370_v55, 0  ;;  %v376_v0 = vsel %vm1317_vm5, %v371_v62, 0  ;;  %vm1330_vm6 = vcmp.ne.s16.totalorder %v921_v63, 0  ;;  %v1135_v20 = vld [vmem:[%s1465_s7] sm:$0xff]   ;;  %v1140_v50 = vld [vmem:[%s1465_s7 + $0x28] sm:$0xff]   ;;  %v1141_v56 = vld [vmem:[%s1465_s7 + $0x30] sm:$0xff]  }
  0x11   :  { %v402_v3 = vsel %vm1330_vm6, %v376_v0, 0  ;;  %1043 = vmatprep.subr.bf16.mxu1 %v1121_v6 }
  0x12   :  { %910 = vmatmul.mubr.msk.bf16.vlgmr.msra.gmra.mrb[0].mxu0 %vm170_vm2, %v1113_v21  ;;  %v112_v21 = vsub.s32 0, %v1205_v5 }
  0x13   :  { %1012 = vmatpush3.bf16.msra.mxu0 %v1114_v24  ;;  %219 = vmatprep.mubr.bf16.mxu0 %v1143_v2  ;;  %v1119_v2 = vld [vmem:[%s1463_s6] sm:$0xff]  }
  0x14   :  { %1013 = vmatprep.subr.bf16.mxu0 %v1116_v43  ;;  %1008 = vmatmul.mubr.msk.bf16.vlgmr.msra.gmra.mrb[0].mxu1 %vm170_vm2, %v274_v57  ;;  %v113_v23 = vrot.slane %v1392_v22, %v112_v21 }
  0x15   :  { %1044 = vmatpush3.bf16.msra.mxu1 %v1121_v6 }
  0x16   :  { %1045 = vmatprep.subr.bf16.mxu1 %v1123_v8 }
  0x17   :  { %1014 = vmatpush3.bf16.msra.mxu0 %v1116_v43 }
  0x18   :  { %1015 = vmatprep.subr.bf16.mxu0 %v1117_v54 }
  0x19   :  { %1046 = vmatpush3.bf16.msra.mxu1 %v1123_v8 }
  0x1a   :  { %911 = vmatmul.mubr.msk.bf16.gmra.mrb[4].mxu0 %vm170_vm2, %v1115_v29  ;;  %1047 = vmatprep.subr.bf16.mxu1 %v1125_v10 }
  0x1b   :  { %1016 = vmatpush3.bf16.msra.mxu0 %v1117_v54  ;;  %1019 = vmatprep.mubr.msk.bf16.mxu0 %vm170_vm2, %v401_v61 }
  0x1c   :  { %1017 = vmatprep.subr.bf16.mxu0 %v1118_v60 }
  0x1d   :  { %1048 = vmatpush3.bf16.msra.mxu1 %v1125_v10 }
  0x1e   :  { %1049 = vmatprep.subr.bf16.mxu1 %v1127_v12 }
  0x1f   :  { %1018 = vmatpush3.bf16.msra.mxu0 %v1118_v60 }
  0x20   :  { %1023 = vmatprep.subr.bf16.mxu0 %v1119_v2 }
  0x21   :  { %1050 = vmatpush3.bf16.msra.mxu1 %v1127_v12 }
  0x22   :  { %1020 = vmatmul.mubr.msk.bf16.vlgmr.msra.gmra.mrb[8].mxu0 %vm170_vm2, %v402_v3  ;;  %1051 = vmatprep.subr.bf16.mxu1 %v1129_v14 }
  0x23   :  { %1024 = vmatpush3.bf16.msra.mxu0 %v1119_v2 }
  0x24   :  { %1025 = vmatprep.subr.bf16.mxu0 %v1120_v4 }
  0x25   :  { %1052 = vmatpush3.bf16.msra.mxu1 %v1129_v14 }
  0x26   :  { %1053 = vmatprep.subr.bf16.mxu1 %v1131_v16 }
  0x27   :  { %1026 = vmatpush3.bf16.msra.mxu0 %v1120_v4 }
  0x28   :  { %1027 = vmatprep.subr.bf16.mxu0 %v1122_v7 }
  0x29   :  { %1054 = vmatpush3.bf16.msra.mxu1 %v1131_v16  ;;  %v1138_v16 = vld [vmem:[%s1465_s7 + $0x18] sm:$0xff]  }
  0x2a   :  { %1055 = vmatprep.subr.bf16.mxu1 %v1133_v18 }
  0x2b   :  { %1028 = vmatpush3.bf16.msra.mxu0 %v1122_v7 }
  0x2c   :  { %1029 = vmatprep.subr.bf16.mxu0 %v1124_v9 }
  0x2d   :  { %1056 = vmatpush3.bf16.msra.mxu1 %v1133_v18 }
  0x2e   :  { %1057 = vmatprep.subr.bf16.mxu1 %v1134_v19 }
  0x2f   :  { %1030 = vmatpush3.bf16.msra.mxu0 %v1124_v9 }
  0x30   :  { %1031 = vmatprep.subr.bf16.mxu0 %v1126_v11 }
  0x31   :  { %1058 = vmatpush3.bf16.msra.mxu1 %v1134_v19 }
  0x32   :  { %1063 = vmatprep.subr.bf16.mxu1 %v1135_v20 }
  0x33   :  { %1032 = vmatpush3.bf16.msra.mxu0 %v1126_v11 }
  0x34   :  { %1033 = vmatprep.subr.bf16.mxu0 %v1128_v13 }
  0x37   :  { %1034 = vmatpush3.bf16.msra.mxu0 %v1128_v13 }
  0x38   :  { %1035 = vmatprep.subr.bf16.mxu0 %v1130_v15 }
  0x3b   :  { %1036 = vmatpush3.bf16.msra.mxu0 %v1130_v15  ;;  %v1136_v15 = vld [vmem:[%s1465_s7 + $0x8] sm:$0xff]  }
  0x3c   :  { %1037 = vmatprep.subr.bf16.mxu0 %v1132_v17 }
  0x3f   :  { %1038 = vmatpush3.bf16.msra.mxu0 %v1132_v17  ;;  %v1142_v17 = vld [vmem:[%s1465_s7 + $0x38] sm:$0xff]  }
  0xe5   :  { %v211_v24 = vpop.f32.mrb[0].mxu0 }
  0xe6   :  { %v1395_v25 = vpop.f32.mrb[1].mxu0  ;;  %v212_v26 = vadd.f32 %v211_v24, %v113_v23 }
  0xe7   :  { %v215_v27 = vpop.f32.mrb[2].mxu0  ;;  %v1009_v29 = vpop.f32.mrb[0].mxu1 }
  0xe8   :  { %v1397_v28 = vpop.f32.mrb[3].mxu0  ;;  %v216_v30 = vadd.f32 %v215_v27, %v113_v23  ;;  %v347_v31 = vpop.f32.mrb[1].mxu1  ;;  %v928_v27 = vld [vmem:[%s1467_s8] ss:$0 sm:$0xff] }
  0xe9   :  { %v362_v32 = vadd.f32 %v347_v31, %v212_v26  ;;  %v1010_v34 = vpop.f32.mrb[2].mxu1  ;;  %v116_v26 = vsub.s32 1, %v1205_v5 }
  0xea   :  { %v350_v35 = vpop.f32.mrb[3].mxu1 }
  0xeb   :  { %v363_v36 = vadd.f32 %v350_v35, %v216_v30 }
  0xed   :  { %v221_v37 = vpop.f32.mrb[4].mxu0 }
  0xee   :  { %v222_v38 = vadd.f32 %v221_v37, %v113_v23  ;;  %v1399_v39 = vpop.f32.mrb[5].mxu0 }
  0xef   :  { %v225_v41 = vpop.f32.mrb[6].mxu0 }
  0xf0   :  { %v226_v42 = vadd.f32 %v225_v41, %v113_v23  ;;  %v1401_v43 = vpop.f32.mrb[7].mxu0  ;;  %v364_v44 = vadd.f32 %v1009_v29, %v222_v38  ;;  %v117_v29 = vrot.slane %v1392_v22, %v116_v26 }
  0xf2   :  { %v365_v45 = vadd.f32 %v1010_v34, %v226_v42  ;;  %v224_v59 = vadd.f32 %v1399_v39, %v117_v29  ;;  %v228_v5 = vadd.f32 %v1401_v43, %v117_v29  ;;  %v218_v22 = vadd.f32 %v1397_v28, %v117_v29 }
  0xf5   :  { %v1021_v46 = vpop.f32.mrb[8].mxu0 }
  0xf6   :  { %v492_v47 = vadd.f32 %v1021_v46, %v364_v44  ;;  %v475_v48 = vpop.f32.mrb[9].mxu0 }
  0xf7   :  { %v490_v49 = vadd.f32 %v475_v48, %v362_v32  ;;  %v1022_v51 = vpop.f32.mrb[10].mxu0 }
  0xf8   :  { %v493_v52 = vadd.f32 %v1022_v51, %v365_v45  ;;  %v478_v53 = vpop.f32.mrb[11].mxu0  ;;  %v496_v55 = vmax.f32 %v492_v47, 0.0 }
  0xf9   :  { %v491_v54 = vadd.f32 %v478_v53, %v363_v36  ;;  %v494_v58 = vmax.f32 %v490_v49, 0.0  ;;  %v214_v36 = vadd.f32 %v1395_v25, %v117_v29 }
  0xfa   :  { %v497_v57 = vmax.f32 %v493_v52, 0.0 }
  0xfb   :  { %v495_v60 = vmax.f32 %v491_v54, 0.0 }
  0xfc   :  { %v499_v61 = vpack.c.bf16 %v497_v57, %v496_v55 }
  0xfd   :  { %v498_v62 = vpack.c.bf16 %v495_v60, %v494_v58 }
  0xfe   :  { %v628_v63 = vshrl.u32 %v499_v61, 16  ;;  %v631_v0 = vshll.u32 %v499_v61, 16 }
  0xff   :  { %v621_v2 = vshrl.u32 %v498_v62, 16  ;;  %1039 = vmatprep.mubr.bf16.mxu0 %v498_v62  ;;  %v624_v3 = vshll.u32 %v498_v62, 16 }
 0x100   :  { %v630_v4 = vrot.slane %v628_v63, 7  ;;  %1040 = vmatmul.mubr.bf16.vlgmr.msra.gmra.mrb[12].mxu0 %v499_v61  ;;  %v759_v11 = vrot.slane %v631_v0, 1 }
 0x101   :  { %v623_v6 = vrot.slane %v621_v2, 7  ;;  %v757_v7 = vrot.slane %v624_v3, 1 }
 0x102   :  { %v633_v8 = vor.u32 %v631_v0, %v630_v4  ;;  %v761_v18 = vor.u32 %v759_v11, %v628_v63 }
 0x103   :  { %v626_v9 = vor.u32 %v624_v3, %v623_v6  ;;  %v758_v10 = vor.u32 %v757_v7, %v621_v2 }
 0x104   :  { %v634_v12 = vsel %vm230_vm0, %v623_v6, %v633_v8  ;;  %v764_v19 = vsel %vm1317_vm5, %v761_v18, 0 }
 0x105   :  { %v637_v13 = vsel %vm1269_vm11, 0, %v626_v9  ;;  %v760_v14 = vsel %vm366_vm7, %v758_v10, %v759_v11 }
 0x106   :  { %1059 = vmatprep.mubr.msk.bf16.mxu1 %vm1277_vm13, %v637_v13 }
 0x107   :  { %1060 = vmatmul.mubr.msk.bf16.vlgmr.msra.gmra.mrb[4].mxu1 %vm1292_vm15, %v634_v12 }
 0x108   :  { %1064 = vmatpush3.bf16.msra.mxu1 %v1135_v20  ;;  %1079 = vmatprep.mubr.msk.bf16.mxu1 %vm1308_vm4, %v760_v14 }
 0x109   :  { %1065 = vmatprep.subr.bf16.mxu1 %v1136_v15 }
 0x10c   :  { %1066 = vmatpush3.bf16.msra.mxu1 %v1136_v15 }
 0x10d   :  { %1067 = vmatprep.subr.bf16.mxu1 %v1137_v33 }
 0x110   :  { %1068 = vmatpush3.bf16.msra.mxu1 %v1137_v33 }
 0x111   :  { %1069 = vmatprep.subr.bf16.mxu1 %v1138_v16 }
 0x114   :  { %1070 = vmatpush3.bf16.msra.mxu1 %v1138_v16 }
 0x115   :  { %1071 = vmatprep.subr.bf16.mxu1 %v1139_v40 }
 0x118   :  { %1072 = vmatpush3.bf16.msra.mxu1 %v1139_v40 }
 0x119   :  { %1073 = vmatprep.subr.bf16.mxu1 %v1140_v50 }
 0x11c   :  { %1074 = vmatpush3.bf16.msra.mxu1 %v1140_v50 }
 0x11d   :  { %1075 = vmatprep.subr.bf16.mxu1 %v1141_v56 }
 0x120   :  { %1076 = vmatpush3.bf16.msra.mxu1 %v1141_v56 }
 0x121   :  { %1077 = vmatprep.subr.bf16.mxu1 %v1142_v17 }
 0x124   :  { %1078 = vmatpush3.bf16.msra.mxu1 %v1142_v17 }
 0x127   :  { %1080 = vmatmul.mubr.msk.bf16.vlgmr.msra.gmra.mrb[4].mxu1 %vm1330_vm6, %v764_v19 }
 0x1d3   :  { %v1041_v20 = vpop.f32.mrb[12].mxu0 }
 0x1d4   :  { %v605_v21 = vpop.f32.mrb[13].mxu0  ;;  %v614_v30 = vadd.f32 %v1041_v20, %v928_v27 }
 0x1d5   :  { %v1042_v23 = vpop.f32.mrb[14].mxu0  ;;  %v606_v31 = vadd.f32 %v928_v27, %v605_v21 }
 0x1d6   :  { %v608_v24 = vpop.f32.mrb[15].mxu0  ;;  %v617_v34 = vadd.f32 %v1042_v23, %v928_v27 }
 0x1d7   :  { %v609_v37 = vadd.f32 %v928_v27, %v608_v24 }
 0x1fa   :  { %v1081_v32 = vpop.f32.mrb[4].mxu1 }
 0x1fb   :  { %v1084_v1 = vadd.f32 %v1081_v32, %v614_v30  ;;  %v865_v35 = vpop.f32.mrb[5].mxu1 }
 0x1fc   :  { %v1086_v38 = vadd.f32 %v865_v35, %v606_v31  ;;  %v1082_v41 = vpop.f32.mrb[6].mxu1 }
 0x1fd   :  { %v886_v42 = vadd.f32 %v1084_v1, %v224_v59  ;;  %v1088_v44 = vadd.f32 %v1082_v41, %v617_v34  ;;  %v868_v45 = vpop.f32.mrb[7].mxu1 }
 0x1fe   :  { %v884_v46 = vadd.f32 %v1086_v38, %v214_v36  ;;  %v1090_v47 = vadd.f32 %v868_v45, %v609_v37 }
 0x1ff   :  { %v890_v48 = vmax.f32 %v886_v42, 0.0  ;;  %v887_v49 = vadd.f32 %v1088_v44, %v228_v5 }
 0x200   :  { %v888_v39 = vmax.f32 %v884_v46, 0.0  ;;  %v885_v51 = vadd.f32 %v1090_v47, %v218_v22 }
 0x201   :  { %894 = vst [vmem:[%s1468_s9 + $0x10] sm:$0xff] %v890_v48  ;;  %v891_v25 = vmax.f32 %v887_v49, 0.0 }
 0x202   :  { %892 = vst [vmem:[%s1468_s9] sm:$0xff] %v888_v39  ;;  %v889_v43 = vmax.f32 %v885_v51, 0.0 }
 0x203   :  { %895 = vst [vmem:[%s1468_s9 + $0x18] sm:$0xff] %v891_v25 }
 0x204   :  { %893 = vst [vmem:[%s1468_s9 + $0x8] sm:$0xff] %v889_v43 }

</bundles_post_ra>
